<compile_context>
chip_gen: v7x
topology: tpu7x:2x2x1
jax: 0.10.0
libtpu: 0.0.40
codegen_flags: <defaults>
</compile_context>

<pallas_src>
import functools

import jax
import jax.numpy as jnp
from jax import lax
from jax.experimental import pallas as pl
from jax.experimental.pallas import tpu as pltpu

EPS = 1e-5  # torch.nn.LayerNorm default


def _layernorm_packed_kernel(x_ref, w_ref, b_ref, o_ref, *, channels, shift):
    # x_ref : (block_rows, 128) packed tile; each row holds `pack` points,
    #         each point occupying a contiguous `channels`-lane segment.
    # w_ref/b_ref : (1, 128) f32, lane-dense (weight tiled `pack` times).
    cp = x_ref.shape[-1]
    x = x_ref[...].astype(jnp.float32)

    # Block-diagonal 0/1 segment-sum matrix built in-register (no HBM input,
    # no wrapper-side build).  channels is a power of two here, so segment id
    # is a right shift.
    li = lax.broadcasted_iota(jnp.int32, (cp, cp), 0) >> shift
    lj = lax.broadcasted_iota(jnp.int32, (cp, cp), 1) >> shift
    seg = (li == lj).astype(jnp.bfloat16)

    inv_c = jnp.float32(1.0 / channels)

    # --- mean: compensated bf16 split -> two single-pass MXU matmuls, f32 acc.
    x_hi = x.astype(jnp.bfloat16)
    x_lo = (x - x_hi.astype(jnp.float32)).astype(jnp.bfloat16)
    s = (jnp.dot(x_hi, seg, preferred_element_type=jnp.float32)
         + jnp.dot(x_lo, seg, preferred_element_type=jnp.float32))
    mean = s * inv_c

    # --- variance: centered form (square in f32, round once to bf16).
    xc = x - mean
    xcsq = (xc * xc).astype(jnp.bfloat16)
    var = jnp.dot(xcsq, seg, preferred_element_type=jnp.float32) * inv_c
    inv = lax.rsqrt(var + EPS)  # EUP slot

    o_ref[...] = (xc * inv * w_ref[...] + b_ref[...]).astype(o_ref.dtype)


def _layernorm_rowwise_kernel(x_ref, w_ref, b_ref, o_ref):
    # Fallback for channel counts that do not divide 128: plain lane reduction
    # on (block_rows, C) tiles.  Stays memory-bound (no MXU work).
    x = x_ref[...].astype(jnp.float32)
    mean = jnp.mean(x, axis=-1, keepdims=True)
    xc = x - mean
    var = jnp.mean(xc * xc, axis=-1, keepdims=True)
    inv = lax.rsqrt(var + EPS)
    o_ref[...] = (xc * inv * w_ref[...] + b_ref[...]).astype(o_ref.dtype)


def _pick_block_rows(rows, block_rows):
    # Keep >= 2 grid steps whenever possible (both v7x TensorCores busy),
    # sublane dim a multiple of 8; large inputs keep the full tile.
    half = ((pl.cdiv(rows, 2) + 7) // 8) * 8
    return min(block_rows, max(8, half))


_COMPILER_PARAMS = pltpu.CompilerParams(
    dimension_semantics=("parallel",),
    # Above v5e's 16 MiB scoped default, well under v7x's 64 MiB physical.
    vmem_limit_bytes=40 * 1024 * 1024,
)


def _layer_norm_rowwise(x, weight, bias, *, block_rows):
    n, c = x.shape
    # Cap the tile so a single f32 buffer stays ~<= 2 MiB even for huge C.
    vmem_cap_rows = max(8, (((2 * 1024 * 1024) // (4 * c)) // 8) * 8)
    block_rows = min(_pick_block_rows(n, block_rows), vmem_cap_rows)
    grid_rows = pl.cdiv(n, block_rows)

    wp = weight.astype(jnp.float32).reshape(1, c)
    bp = bias.astype(jnp.float32).reshape(1, c)

    return pl.pallas_call(
        _layernorm_rowwise_kernel,
        out_shape=jax.ShapeDtypeStruct((n, c), x.dtype),
        grid_spec=pltpu.PrefetchScalarGridSpec(
            num_scalar_prefetch=0,
            grid=(grid_rows,),
            in_specs=[
                pl.BlockSpec((block_rows, c), lambda i: (i, 0)),
                pl.BlockSpec((1, c), lambda i: (0, 0)),
                pl.BlockSpec((1, c), lambda i: (0, 0)),
            ],
            out_specs=pl.BlockSpec((block_rows, c), lambda i: (i, 0)),
        ),
        compiler_params=_COMPILER_PARAMS,
    )(x, wp, bp)


def layer_norm(x, weight, bias, *, block_rows=4096):
    """LayerNorm over the last axis of x (N, C) with per-channel weight/bias."""
    n, c = x.shape
    out_dtype = x.dtype

    # MXU segmented-reduction path only when C divides 128 (C is then a power
    # of two); otherwise use the plain lane-reduction kernel.
    if not (c <= 128 and 128 % c == 0):
        return _layer_norm_rowwise(x, weight, bias, block_rows=block_rows)

    pack = 128 // c
    cp = 128
    shift = c.bit_length() - 1  # c is a power of two here

    # Pad at most pack-1 points so (n, c) -> (rows, 128) is a pure bitcast
    # reshape (no extra HBM pass in the common aligned case).
    rows = pl.cdiv(n, pack)
    n_pack = rows * pack
    if n_pack != n:
        x = jnp.pad(x, ((0, n_pack - n), (0, 0)))
    xp = x.reshape(rows, cp)

    wp = jnp.tile(weight.astype(jnp.float32), pack).reshape(1, cp)
    bp = jnp.tile(bias.astype(jnp.float32), pack).reshape(1, cp)

    block_rows = _pick_block_rows(rows, block_rows)
    grid_rows = pl.cdiv(rows, block_rows)  # ragged last block is fine

    kernel = functools.partial(_layernorm_packed_kernel, channels=c, shift=shift)

    out = pl.pallas_call(
        kernel,
        out_shape=jax.ShapeDtypeStruct((rows, cp), out_dtype),
        grid_spec=pltpu.PrefetchScalarGridSpec(
            num_scalar_prefetch=0,
            grid=(grid_rows,),
            in_specs=[
                pl.BlockSpec((block_rows, cp), lambda i: (i, 0)),  # packed features
                pl.BlockSpec((1, cp), lambda i: (0, 0)),           # weight (fetched once)
                pl.BlockSpec((1, cp), lambda i: (0, 0)),           # bias   (fetched once)
            ],
            out_specs=pl.BlockSpec((block_rows, cp), lambda i: (i, 0)),
        ),
        compiler_params=_COMPILER_PARAMS,
    )(xp, wp, bp)

    out = out.reshape(n_pack, c)
    if n_pack != n:  # only when N was not a multiple of `pack` (<= 3 rows)
        out = out[:n]
    return out


def _reference(x, weight, bias):
    x32 = x.astype(jnp.float32)
    mean = jnp.mean(x32, axis=-1, keepdims=True)
    var = jnp.mean((x32 - mean) ** 2, axis=-1, keepdims=True)
    return ((x32 - mean) / jnp.sqrt(var + EPS) * weight + bias).astype(x.dtype)


if __name__ == "__main__":
    # TODO(synk): PointTensor / x.new_tensor bookkeeping (coords, strides) has no
    # kernel equivalent; only the feature-matrix LayerNorm is implemented here.
    key = jax.random.PRNGKey(0)
    ok = True

    # Packed MXU path (C divides 128): tile-aligned, ragged grid, and a point
    # count that is not a multiple of pack (exercises the tiny pad + slice).
    channels = 32
    weight = jnp.ones((channels,), dtype=jnp.float32)   # module init: weight=1
    bias = jnp.zeros((channels,), dtype=jnp.float32)    # module init: bias=0
    for num_points in (128, 200, 203):
        key, k = jax.random.split(key)
        x = jax.random.normal(k, (num_points, channels), dtype=jnp.float32)
        out = jax.block_until_ready(layer_norm(x, weight, bias))
        ref = _reference(x, weight, bias)
        # bf16 single-pass second-moment matmul => ~1e-4-level stats error.
        ok &= bool(jnp.allclose(out, ref, atol=2e-3, rtol=2e-3))

    # Row-wise fallback path (C does not divide 128): pure f32 lane reduction.
    channels = 48
    weight = jnp.ones((channels,), dtype=jnp.float32)
    bias = jnp.zeros((channels,), dtype=jnp.float32)
    key, k = jax.random.split(key)
    x = jax.random.normal(k, (100, channels), dtype=jnp.float32)
    out = jax.block_until_ready(layer_norm(x, weight, bias))
    ref = _reference(x, weight, bias)
    ok &= bool(jnp.allclose(out, ref, atol=2e-5, rtol=1e-5))

    assert ok
    print("KERNEL_OK")
</pallas_src>

<mosaic_0001>
module attributes {stable_mosaic.version = 11 : i64} {
  func.func @_layernorm_packed_kernel(%arg0: i32, %arg1: memref<16x128xf32, #tpu.memory_space<vmem>>, %arg2: memref<1x128xf32, #tpu.memory_space<vmem>>, %arg3: memref<1x128xf32, #tpu.memory_space<vmem>>, %arg4: memref<16x128xf32, #tpu.memory_space<vmem>>) attributes {dimension_semantics = [#tpu.dimension_semantics<parallel>], iteration_bounds = array<i64: 2>, scalar_prefetch = 0 : i64, scratch_operands = 0 : i64, tpu.core_type = #tpu.core_type<tc>, window_params = [{transform_indices = @transform_0, window_bounds = array<i64: 16, 128>}, {pipeline_mode = #tpu.pipeline_mode<synchronous>, transform_indices = @transform_1, window_bounds = array<i64: 1, 128>}, {pipeline_mode = #tpu.pipeline_mode<synchronous>, transform_indices = @transform_2, window_bounds = array<i64: 1, 128>}, {transform_indices = @transform_3, window_bounds = array<i64: 16, 128>}]} {
    %c0 = arith.constant 0 : index
    %c0_0 = arith.constant 0 : index
    %0 = vector.load %arg1[%c0, %c0_0] : memref<16x128xf32, #tpu.memory_space<vmem>>, vector<16x128xf32>
    %1 = tpu.iota {dimensions = array<i32: 0>} : vector<128x128xi32>
    %c5_i32 = arith.constant 5 : i32
    %2 = vector.broadcast %c5_i32 : i32 to vector<128x128xi32>
    %3 = arith.shrsi %1, %2 : vector<128x128xi32>
    %4 = tpu.iota {dimensions = array<i32: 1>} : vector<128x128xi32>
    %c5_i32_1 = arith.constant 5 : i32
    %5 = vector.broadcast %c5_i32_1 : i32 to vector<128x128xi32>
    %6 = arith.shrsi %4, %5 : vector<128x128xi32>
    %7 = arith.cmpi eq, %3, %6 : vector<128x128xi32>
    %8 = arith.extui %7 : vector<128x128xi1> to vector<128x128xi32>
    %9 = arith.sitofp %8 : vector<128x128xi32> to vector<128x128xf32>
    %10 = arith.truncf %9 : vector<128x128xf32> to vector<128x128xbf16>
    %11 = arith.truncf %0 : vector<16x128xf32> to vector<16x128xbf16>
    %12 = arith.extf %11 : vector<16x128xbf16> to vector<16x128xf32>
    %13 = arith.subf %0, %12 : vector<16x128xf32>
    %14 = arith.truncf %13 : vector<16x128xf32> to vector<16x128xbf16>
    %cst = arith.constant dense<0.000000e+00> : vector<16x128xf32>
    %15 = tpu.matmul %11, %10, %cst {dimension_numbers = #tpu.dot_dimension_numbers<[1], [0], [0], [1], [0, 0, 1, 1], [], []>} : vector<16x128xbf16>, vector<128x128xbf16>, vector<16x128xf32> -> vector<16x128xf32>
    %cst_2 = arith.constant dense<0.000000e+00> : vector<16x128xf32>
    %16 = tpu.matmul %14, %10, %cst_2 {dimension_numbers = #tpu.dot_dimension_numbers<[1], [0], [0], [1], [0, 0, 1, 1], [], []>} : vector<16x128xbf16>, vector<128x128xbf16>, vector<16x128xf32> -> vector<16x128xf32>
    %17 = arith.addf %15, %16 : vector<16x128xf32>
    %cst_3 = arith.constant 3.125000e-02 : f32
    %18 = vector.broadcast %cst_3 : f32 to vector<16x128xf32>
    %19 = arith.mulf %17, %18 : vector<16x128xf32>
    %20 = arith.subf %0, %19 : vector<16x128xf32>
    %21 = arith.mulf %20, %20 : vector<16x128xf32>
    %22 = arith.truncf %21 : vector<16x128xf32> to vector<16x128xbf16>
    %cst_4 = arith.constant dense<0.000000e+00> : vector<16x128xf32>
    %23 = tpu.matmul %22, %10, %cst_4 {dimension_numbers = #tpu.dot_dimension_numbers<[1], [0], [0], [1], [0, 0, 1, 1], [], []>} : vector<16x128xbf16>, vector<128x128xbf16>, vector<16x128xf32> -> vector<16x128xf32>
    %cst_5 = arith.constant 3.125000e-02 : f32
    %24 = vector.broadcast %cst_5 : f32 to vector<16x128xf32>
    %25 = arith.mulf %23, %24 : vector<16x128xf32>
    %cst_6 = arith.constant 9.99999974E-6 : f32
    %26 = vector.broadcast %cst_6 : f32 to vector<16x128xf32>
    %27 = arith.addf %25, %26 : vector<16x128xf32>
    %28 = math.rsqrt %27 : vector<16x128xf32>
    %29 = arith.mulf %20, %28 : vector<16x128xf32>
    %c0_7 = arith.constant 0 : index
    %c0_8 = arith.constant 0 : index
    %30 = vector.load %arg2[%c0_7, %c0_8] : memref<1x128xf32, #tpu.memory_space<vmem>>, vector<1x128xf32>
    %31 = vector.broadcast %30 : vector<1x128xf32> to vector<16x128xf32>
    %32 = arith.mulf %29, %31 : vector<16x128xf32>
    %c0_9 = arith.constant 0 : index
    %c0_10 = arith.constant 0 : index
    %33 = vector.load %arg3[%c0_9, %c0_10] : memref<1x128xf32, #tpu.memory_space<vmem>>, vector<1x128xf32>
    %34 = vector.broadcast %33 : vector<1x128xf32> to vector<16x128xf32>
    %35 = arith.addf %32, %34 : vector<16x128xf32>
    %c0_11 = arith.constant 0 : index
    %c0_12 = arith.constant 0 : index
    %36 = vector.load %arg4[%c0_11, %c0_12] : memref<16x128xf32, #tpu.memory_space<vmem>>, vector<16x128xf32>
    tpu.vector_store %arg4[%c0_11, %c0_12], %35 {strides = array<i32>} : memref<16x128xf32, #tpu.memory_space<vmem>>, vector<16x128xf32>,
    return
  }
  func.func @transform_0(%arg0: i32) -> (i32, i32) {
    %c0_i32 = arith.constant 0 : i32
    %c0_i32_0 = arith.constant 0 : i32
    return %arg0, %c0_i32 : i32, i32
  }
  func.func @transform_1(%arg0: i32) -> (i32, i32) {
    %c0_i32 = arith.constant 0 : i32
    %c0_i32_0 = arith.constant 0 : i32
    %c0_i32_1 = arith.constant 0 : i32
    return %c0_i32, %c0_i32_0 : i32, i32
  }
  func.func @transform_2(%arg0: i32) -> (i32, i32) {
    %c0_i32 = arith.constant 0 : i32
    %c0_i32_0 = arith.constant 0 : i32
    %c0_i32_1 = arith.constant 0 : i32
    return %c0_i32, %c0_i32_0 : i32, i32
  }
  func.func @transform_3(%arg0: i32) -> (i32, i32) {
    %c0_i32 = arith.constant 0 : i32
    %c0_i32_0 = arith.constant 0 : i32
    return %arg0, %c0_i32 : i32, i32
  }
}

</mosaic_0001>

<bundles_post_ra>
// kernel: tpu_custom_call.1
= control target key start
LH: loop header
LB: loop body
LE: loop exit
PB: predicated region body
PF: predicated region fallthrough
CT: control target
= control target key end

     0   :  { %8 = vsyncpa [#allocation3], 0  ;;  %s1250_s0 = inlined_call_operand.hbm [shape: f32[32,128], index: 0, kind: input, shape index: {}]   ;;  %s1251_s1 = inlined_call_operand.vmem [shape: f32[1,128], index: 1, kind: input, shape index: {}]   ;;  %s1252_s2 = inlined_call_operand.vmem [shape: f32[1,128], index: 2, kind: input, shape index: {}]   ;;  %s1253_s3 = inlined_call_operand.hbm [shape: f32[32,128], index: 3, kind: output, shape index: {}]  }
   0x1   :  { %10 = vsyncpa [#allocation3 + $0x1], 0 }
   0x2   :  { %11 = vsyncpa [#allocation4], 0 }
   0x3   :  { %13 = vsyncpa [#allocation4 + $0x1], 0  ;;  %s894_s12 = smov 0   ;;  %s896_s13 = smov 0  }
   0x4   :  { %s898_s14 = smov 0   ;;  %s900_s15 = smov 0  }
   0x5 LB: > { %s915_s16 = sadd.s32 4294967295, %s863_s15   ;;  %s537_s17 = sadd.s32 4294967294, %s863_s15   ;;  %s863_s15 = sphi %s900_s15, %s1282_s15   ;;  %s859_s14 = sphi %s898_s14, %s1281_s14   ;;  %s855_s13 = sphi %s896_s13, %s1280_s13   ;;  %s851_s12 = sphi %s894_s12, %s1279_s12  }
   0x6   : > { %s919_s18 = sadd.s32 1, %s863_s15   ;;  %s26_s19 = sadd.s32 1, %s859_s14 }
   0x7   : > { %s23_s20 = ssub.s32 %s863_s15, %s919_s18  ;;  %p33_p0 = scmp.ne.s32.totalorder %s859_s14, %s855_s13 }
   0x8   : > { %p24_p1 = scmp.eq.s32.totalorder %s23_s20, 0  ;;  %p34_p2 = scmp.eq.s32.totalorder %s863_s15, 0 }
   0x9   : > { %p39_p3 = scmp.ne.s32.totalorder %s855_s13, %s851_s12  ;;  %p40_p4 = scmp.eq.s32.totalorder %s915_s16, 0 }
   0xa   : > { %s931_s21 = scalar_select %p24_p1, %s859_s14, %s26_s19  }
   0xb   : > { %p933_p5 = por %p34_p2, %p33_p0  ;;  %p937_p6 = por %p40_p4, %p39_p3 }
   0xc   : > { %p105_p7 = scmp.eq.s32.totalorder %s915_s16, 1  ;;  %p111_p8 = scmp.eq.s32.totalorder %s537_s17, 1 }
   0xd   : > { %p722_p10 = scmp.lt.s32.totalorder %s863_s15, 2  ;;  %s137_s26 = sand.u32 1, %s859_s14  }
   0xe   : > { %p944_p11 = por %p105_p7, %p33_p0  ;;  %p948_p12 = por %p111_p8, %p39_p3 }
   0xf   : > { %s617_s27 = sshll.u32 %s863_s15, 8  ;;  %s540_s28 = sshll.u32 %s137_s26, 4 }
  0x10   : > { %s1257_s24 = scalar_select %p944_p11, 1, 0 }
  0x11   : > { %s1258_s25 = scalar_select %p948_p12, 1, 0 }
  0x12   : > { %s957_s4 = scalar_lea.hbm %s1250_s0, %s617_s27  ;;  %s141_s5 = scalar_lea.vmem [#allocation2], %s540_s28 }
  0x13   : > { %s148_s6 = sshll.u32 %s141_s5, 4  ;;  %p961_p13 = pnand %p722_p10, %p933_p5  ;;  %s965_s6 = int_to_ptr.vmem [resolvable:$true] %s148_s6 }
  0x14   : > { %s967_s8 = scalar_lea.sflag [#allocation3], %s137_s26  ;;  %s767_s9 = scalar_lea.hbm %s957_s4, 256 }
  0x15   : > { %p768_p0 = scmp.ne.s32.totalorder %s957_s4, %s767_s9  ;;  %p769_p1 = pneg %p961_p13 }
  0x16   : > { %s772_s17 = scalar_lea.hbm %s1250_s0, 512  ;;  %p773_p4 = scmp.lt.u32.totalorder %s957_s4, %s1250_s0 }
  0x17   : > { %p770_p2 = pnand %p769_p1, %p768_p0  ;;  %p774_p5 = scmp.lt.u32.totalorder %s772_s17, %s767_s9 }
  0x18   : > { %p776_p8 = scmp.lt.u32.totalorder %s767_s9, %s957_s4 }
  0x19   : > { %p771_p3 = pneg %p770_p2  ;;  %p775_p7 = por %p774_p5, %p773_p4 }
  0x1b   : > { %p777_p10 = por %p776_p8, %p775_p7 }
  0x1d   : > { %p778_p9 = pnand %p777_p10, %p771_p3 }
  0x1f   : > { %781 = shalt.err (!%p778_p9)
}
  0x20   : > { %s782_s22 = scalar_lea.vmem %s965_s6, 256  ;;  %s865_s26 = smov [#allocation2]  }
  0x21   : > { %p783_p0 = scmp.ne.s32.totalorder %s965_s6, %s782_s22  ;;  %s787_s27 = sshll.u32 %s865_s26, 4  ;;  %s788_s27 = int_to_ptr.vmem [resolvable:$false] %s787_s27 }
  0x22   : > { %s789_s28 = scalar_lea.vmem %s788_s27, 512  ;;  %p790_p11 = scmp.lt.s32.totalorder %s965_s6, %s788_s27 }
  0x23   : > { %p785_p2 = pnand %p783_p0, %p769_p1  ;;  %p791_p4 = scmp.lt.s32.totalorder %s789_s28, %s782_s22 }
  0x25   : > { %p786_p12 = pneg %p785_p2  ;;  %p792_p5 = por %p791_p4, %p790_p11 }
  0x27   : > { %p793_p7 = pnand %p792_p5, %p786_p12 }
  0x29   : > { %796 = shalt.err (!%p793_p7)
}
  0x2a   : > { %s866_s29 = smov 128   ;;  %s867_s30 = smov 8  }
  0x2b   : > { %717 = dma.hbm_to_vmem [thread:$0]  (!%p961_p13), %s957_s4, 256, %s965_s6, %s967_s8, %s866_s29, %s866_s29, %s867_s30  }
  0x2c   : > { %p543_p9 = scmp.ge.s32.totalorder %s863_s15, 1  ;;  %p156_p1 = scmp.lt.s32.totalorder %s863_s15, 3 }
  0x2e   : > { %p157_p3 = pnand %p543_p9, %p156_p1 }
  0x2f   : > { %s998_s5 = sand.u32 (!%p157_p3), 1, %s855_s13   ;;  %v194_v0 = vlaneseq (!%p157_p3) }
  0x30   : > { %160 = sbr.rel (%p157_p3) target bundleno = 599 (0x257), region = 32  ;;  %s544_s9 = sshll.u32 (!%p157_p3), %s998_s5, 4 }
  0x31   : > { %s163_s10 = scalar_lea.sflag (!%p157_p3), [#allocation3], %s998_s5  ;;  %s1004_s11 = scalar_lea.vmem (!%p157_p3), [#allocation2], %s544_s9 }
  0x37   : > { %842 = dma.done.wait (%p937_p6), %s163_s10, 256  }
  0x38   : > { %844 = vsyncadd (%p937_p6), %s163_s10, 4294967040  ;;  %v868_v1 = vmov 0.0   ;;  %vm869_vm0 = vmmov 0   ;;  %v1013_v2 = vshrl.u32 %v194_v0, 7  ;;  %v228_v3 = vand.u32 127, %v194_v0  ;;  %v1088_v35 = vld [vmem:[%s1004_s11] sm:$0xff] }
  0x39   : > { %646 = vmatprep.subr.bf16.mxu0 %v868_v1  ;;  %662 = vmatprep.mubr.msk.bf16.mxu0 %vm869_vm0, %v868_v1  ;;  %v870_v19 = vmov 1.0|1.0   ;;  %v1091_v36 = vld [vmem:[%s1004_s11 + $0x8] sm:$0xff]  ;;  %s618_s8 = sshll.u32 %s915_s16, 8  ;;  %s188_s17 = scalar_lea.vmem [#allocation5], %s544_s9 }
  0x3a   : > { %686 = vmatprep.subr.bf16.mxu1 %v868_v1  ;;  %702 = vmatprep.mubr.msk.bf16.mxu1 %vm869_vm0, %v868_v1  ;;  %v196_v4 = vadd.s32 8, %v1013_v2  ;;  %v211_v5 = vshra.s32 %v1013_v2, 5  ;;  %v1020_v6 = vshra.s32 %v228_v3, 5  ;;  %v197_v7 = vadd.s32 16, %v1013_v2  ;;  %s464_s19 = sshll.u32 %s188_s17, 4  ;;  %s1204_s26 = scalar_lea.hbm %s1253_s3, %s618_s8  ;;  %s1206_s19 = int_to_ptr.vmem [resolvable:$true] %s464_s19 }
  0x3b   : > { %v198_v8 = vadd.s32 24, %v1013_v2  ;;  %v199_v9 = vadd.s32 32, %v1013_v2  ;;  %v200_v10 = vadd.s32 40, %v1013_v2  ;;  %v201_v14 = vadd.s32 48, %v1013_v2  ;;  %s451_s27 = scalar_lea.sflag [#allocation4], %s998_s5  ;;  %s797_s16 = scalar_lea.vmem %s1206_s19, 256 }
  0x3c   : > { %v212_v11 = vshra.s32 %v196_v4, 5  ;;  %vm230_vm1 = vcmp.eq.s32.totalorder %v211_v5, %v1020_v6  ;;  %v213_v12 = vshra.s32 %v197_v7, 5  ;;  %v202_v15 = vadd.s32 56, %v1013_v2  ;;  %p798_p6 = scmp.ne.s32.totalorder %s1206_s19, %s797_s16  ;;  %p1276_p11 = scmp.ne.s32.totalorder %s1257_s24, 0 }
  0x3d   : > { %v214_v13 = vshra.s32 %v198_v8, 5  ;;  %v215_v16 = vshra.s32 %v199_v9, 5  ;;  %v216_v17 = vshra.s32 %v200_v10, 5  ;;  %v217_v21 = vshra.s32 %v201_v14, 5  ;;  %v610_v9 = vld [vmem:[%s1251_s1] ss:$0 sm:$0xff] }
  0x3e   : > { %vm231_vm2 = vcmp.eq.s32.totalorder %v212_v11, %v1020_v6  ;;  %vm232_vm3 = vcmp.eq.s32.totalorder %v213_v12, %v1020_v6  ;;  %v218_v22 = vshra.s32 %v202_v15, 5  ;;  %v203_v23 = vadd.s32 64, %v1013_v2  ;;  %v611_v12 = vld [vmem:[%s1252_s2] ss:$0 sm:$0xff]  ;;  %p799_p12 = pnand %p798_p6, %p1276_p11  ;;  %s871_s28 = smov [#allocation5]  }
  0x3f   : > { %vm1031_vm4 = vmpackc.low %vm231_vm2, %vm230_vm1  ;;  %vm233_vm5 = vcmp.eq.s32.totalorder %v214_v13, %v1020_v6  ;;  %vm234_vm7 = vcmp.eq.s32.totalorder %v215_v16, %v1020_v6  ;;  %vm235_vm8 = vcmp.eq.s32.totalorder %v216_v17, %v1020_v6  ;;  %v204_v24 = vadd.s32 72, %v1013_v2  ;;  %s801_s29 = sshll.u32 %s871_s28, 4  ;;  %s802_s29 = int_to_ptr.vmem [resolvable:$false] %s801_s29 }
  0x40   : > { %647 = vmatpush3.bf16.msk.msra.mxu0 %vm1031_vm4, %v870_v19  ;;  %687 = vmatpush3.bf16.msk.msra.mxu1 %vm1031_vm4, %v870_v19  ;;  %vm1043_vm6 = vmpackc.low %vm233_vm5, %vm232_vm3  ;;  %vm236_vm10 = vcmp.eq.s32.totalorder %v217_v21, %v1020_v6  ;;  %vm237_vm11 = vcmp.eq.s32.totalorder %v218_v22, %v1020_v6  ;;  %v219_v26 = vshra.s32 %v203_v23, 5  ;;  %v205_v28 = vadd.s32 80, %v1013_v2  ;;  %p800_p13 = pneg %p799_p12  ;;  %s803_s30 = scalar_lea.vmem %s802_s29, 512 }
  0x41   : > { %648 = vmatprep.subr.bf16.mxu0 %v868_v1  ;;  %688 = vmatprep.subr.bf16.mxu1 %v868_v1  ;;  %vm1059_vm9 = vmpackc.low %vm235_vm8, %vm234_vm7  ;;  %v220_v27 = vshra.s32 %v204_v24, 5  ;;  %v206_v29 = vadd.s32 88, %v1013_v2  ;;  %v207_v31 = vadd.s32 96, %v1013_v2  ;;  %v208_v32 = vadd.s32 104, %v1013_v2  ;;  %p804_p8 = scmp.lt.s32.totalorder %s1206_s19, %s802_s29  ;;  %p805_p10 = scmp.lt.s32.totalorder %s803_s30, %s797_s16 }
  0x42   : > { %vm1075_vm12 = vmpackc.low %vm237_vm11, %vm236_vm10  ;;  %vm238_vm13 = vcmp.eq.s32.totalorder %v219_v26, %v1020_v6  ;;  %v221_v33 = vshra.s32 %v205_v28, 5  ;;  %v209_v38 = vadd.s32 112, %v1013_v2  ;;  %v210_v39 = vadd.s32 120, %v1013_v2 }
  0x43   : > { %vm239_vm14 = vcmp.eq.s32.totalorder %v220_v27, %v1020_v6  ;;  %v222_v34 = vshra.s32 %v206_v29, 5  ;;  %v223_v40 = vshra.s32 %v207_v31, 5  ;;  %v224_v41 = vshra.s32 %v208_v32, 5  ;;  %p806_p0 = por %p805_p10, %p804_p8 }
  0x44   : > { %649 = vmatpush3.bf16.msk.msra.mxu0 %vm1043_vm6, %v870_v19  ;;  %689 = vmatpush3.bf16.msk.msra.mxu1 %vm1043_vm6, %v870_v19  ;;  %vm1097_vm15 = vmpackc.low %vm239_vm14, %vm238_vm13  ;;  %vm240_vm1 = vcmp.eq.s32.totalorder %v221_v33, %v1020_v6  ;;  %v286_v42 = vpack.c.bf16 %v1091_v36, %v1088_v35  ;;  %v225_v44 = vshra.s32 %v209_v38, 5  ;;  %v226_v45 = vshra.s32 %v210_v39, 5 }
  0x45   : > { %650 = vmatprep.subr.bf16.mxu0 %v868_v1  ;;  %690 = vmatprep.subr.bf16.mxu1 %v868_v1  ;;  %vm241_vm2 = vcmp.eq.s32.totalorder %v222_v34, %v1020_v6  ;;  %vm242_vm5 = vcmp.eq.s32.totalorder %v223_v40, %v1020_v6  ;;  %vm243_vm7 = vcmp.eq.s32.totalorder %v224_v41, %v1020_v6  ;;  %p807_p2 = pnand %p806_p0, %p800_p13 }
  0x46   : > { %vm1115_vm3 = vmpackc.low %vm241_vm2, %vm240_vm1  ;;  %v287_v46 = vunpack.c.l.bf16 %v286_v42  ;;  %v288_v47 = vunpack.c.h.bf16 %v286_v42  ;;  %vm244_vm10 = vcmp.eq.s32.totalorder %v225_v44, %v1020_v6  ;;  %vm245_vm11 = vcmp.eq.s32.totalorder %v226_v45, %v1020_v6 }
  0x47   : > { %vm1129_vm8 = vmpackc.low %vm243_vm7, %vm242_vm5 }
  0x48   : > { %651 = vmatpush3.bf16.msk.msra.mxu0 %vm1059_vm9, %v870_v19  ;;  %691 = vmatpush3.bf16.msk.msra.mxu1 %vm1059_vm9, %v870_v19  ;;  %v289_v49 = vsub.f32 %v1088_v35, %v287_v46  ;;  %v290_v50 = vsub.f32 %v1091_v36, %v288_v47  ;;  %vm1145_vm13 = vmpackc.low %vm245_vm11, %vm244_vm10 }
  0x49   : > { %652 = vmatprep.subr.bf16.mxu0 %v868_v1  ;;  %692 = vmatprep.subr.bf16.mxu1 %v868_v1 }
  0x4a   : > { %v291_v52 = vpack.c.bf16 %v290_v50, %v289_v49 }
  0x4c   : > { %653 = vmatpush3.bf16.msk.msra.mxu0 %vm1075_vm12, %v870_v19  ;;  %693 = vmatpush3.bf16.msk.msra.mxu1 %vm1075_vm12, %v870_v19 }
  0x4d   : > { %654 = vmatprep.subr.bf16.mxu0 %v868_v1  ;;  %694 = vmatprep.subr.bf16.mxu1 %v868_v1 }
  0x50   : > { %655 = vmatpush3.bf16.msk.msra.mxu0 %vm1097_vm15, %v870_v19  ;;  %695 = vmatpush3.bf16.msk.msra.mxu1 %vm1097_vm15, %v870_v19 }
  0x51   : > { %656 = vmatprep.subr.bf16.mxu0 %v868_v1  ;;  %696 = vmatprep.subr.bf16.mxu1 %v868_v1 }
  0x54   : > { %657 = vmatpush3.bf16.msk.msra.mxu0 %vm1115_vm3, %v870_v19  ;;  %697 = vmatpush3.bf16.msk.msra.mxu1 %vm1115_vm3, %v870_v19 }
  0x55   : > { %658 = vmatprep.subr.bf16.mxu0 %v868_v1  ;;  %698 = vmatprep.subr.bf16.mxu1 %v868_v1 }
  0x58   : > { %659 = vmatpush3.bf16.msk.msra.mxu0 %vm1129_vm8, %v870_v19  ;;  %699 = vmatpush3.bf16.msk.msra.mxu1 %vm1129_vm8, %v870_v19 }
  0x59   : > { %660 = vmatprep.subr.bf16.mxu0 %v868_v1  ;;  %700 = vmatprep.subr.bf16.mxu1 %v868_v1 }
  0x5c   : > { %661 = vmatpush3.bf16.msk.msra.mxu0 %vm1145_vm13, %v870_v19  ;;  %701 = vmatpush3.bf16.msk.msra.mxu1 %vm1145_vm13, %v870_v19 }
  0x5d   : > { %666 = vmatprep.subr.bf16.mxu0 %v868_v1 }
  0x5f   : > { %663 = vmatmul.mubr.bf16.vlgmr.msra.gmra.mrb[0].mxu0 %v291_v52 }
  0x60   : > { %667 = vmatpush3.bf16.msk.msra.mxu0 %vm1031_vm4, %v870_v19  ;;  %682 = vmatprep.mubr.msk.bf16.mxu0 %vm869_vm0, %v868_v1 }
  0x61   : > { %668 = vmatprep.subr.bf16.mxu0 %v868_v1 }
  0x64   : > { %669 = vmatpush3.bf16.msk.msra.mxu0 %vm1043_vm6, %v870_v19 }
  0x65   : > { %670 = vmatprep.subr.bf16.mxu0 %v868_v1 }
  0x68   : > { %671 = vmatpush3.bf16.msk.msra.mxu0 %vm1059_vm9, %v870_v19 }
  0x69   : > { %672 = vmatprep.subr.bf16.mxu0 %v868_v1 }
  0x6c   : > { %673 = vmatpush3.bf16.msk.msra.mxu0 %vm1075_vm12, %v870_v19 }
  0x6d   : > { %674 = vmatprep.subr.bf16.mxu0 %v868_v1 }
  0x70   : > { %675 = vmatpush3.bf16.msk.msra.mxu0 %vm1097_vm15, %v870_v19 }
  0x71   : > { %676 = vmatprep.subr.bf16.mxu0 %v868_v1 }
  0x74   : > { %677 = vmatpush3.bf16.msk.msra.mxu0 %vm1115_vm3, %v870_v19 }
  0x75   : > { %678 = vmatprep.subr.bf16.mxu0 %v868_v1 }
  0x78   : > { %679 = vmatpush3.bf16.msk.msra.mxu0 %vm1129_vm8, %v870_v19 }
  0x79   : > { %680 = vmatprep.subr.bf16.mxu0 %v868_v1 }
  0x7c   : > { %681 = vmatpush3.bf16.msk.msra.mxu0 %vm1145_vm13, %v870_v19 }
  0x7f   : > { %683 = vmatmul.mubr.bf16.vlgmr.msra.gmra.mrb[0].mxu0 %v286_v42 }
 0x152   : > { %v367_v53 = vpop.f32.mrb[0].mxu0 }
 0x153   : > { %v374_v54 = vmul.f32 0.03125, %v367_v53  ;;  %v684_v55 = vpop.f32.mrb[1].mxu0 }
 0x154   : > { %v370_v56 = vpop.f32.mrb[2].mxu0 }
 0x155   : > { %v376_v57 = vsub.f32 %v1088_v35, %v374_v54  ;;  %v375_v58 = vmul.f32 0.03125, %v370_v56  ;;  %v685_v59 = vpop.f32.mrb[3].mxu0 }
 0x157   : > { %v377_v60 = vsub.f32 %v1091_v36, %v375_v58  ;;  %v378_v61 = vmul.f32 %v376_v57, %v376_v57 }
 0x159   : > { %v379_v62 = vmul.f32 %v377_v60, %v377_v60 }
 0x15b   : > { %v380_v63 = vpack.c.bf16 %v379_v62, %v378_v61 }
 0x15d   : > { %703 = vmatmul.mubr.bf16.vlgmr.msra.gmra.mrb[0].mxu1 %v380_v63 }
 0x230   : > { %v415_v0 = vpop.f32.mrb[0].mxu1 }
 0x231   : > { %v422_v1 = vmul.f32 0.03125, %v415_v0  ;;  %v704_v2 = vpop.f32.mrb[1].mxu1 }
 0x232   : > { %v418_v3 = vpop.f32.mrb[2].mxu1 }
 0x233   : > { %v424_v4 = vadd.f32 1e-05, %v422_v1  ;;  %v423_v5 = vmul.f32 0.03125, %v418_v3  ;;  %v705_v6 = vpop.f32.mrb[3].mxu1 }
 0x235   : > { %763 = vrsqrt.f32 %v424_v4  ;;  %v425_v7 = vadd.f32 1e-05, %v423_v5 }
 0x237   : > { %765 = vrsqrt.f32 %v425_v7 }
 0x23f   : > { %v764_v8 = vpop.eup %763 }
 0x240   : > { %v428_v10 = vmul.f32 %v764_v8, %v376_v57 }
 0x241   : > { %v766_v11 = vpop.eup %765 }
 0x242   : > { %v437_v13 = vmul.f32 %v610_v9, %v428_v10  ;;  %v429_v14 = vmul.f32 %v766_v11, %v377_v60 }
 0x244   : > { %v446_v15 = vadd.f32 %v611_v12, %v437_v13  ;;  %v438_v16 = vmul.f32 %v610_v9, %v429_v14 }
 0x246   : > { %v447_v17 = vadd.f32 %v611_v12, %v438_v16  ;;  %448 = vst [vmem:[%s188_s17] sm:$0xff] %v446_v15 }
 0x248   : > { %449 = vst [vmem:[%s188_s17 + $0x8] sm:$0xff] %v447_v17 }
 0x249   : > { %810 = shalt.err (!%p807_p2)
}
 0x24a   : > { %s811_s9 = scalar_lea.hbm %s1204_s26, 256  ;;  %s815_s23 = scalar_lea.hbm %s1253_s3, 512 }
 0x24b   : > { %p812_p4 = scmp.ne.s32.totalorder %s1204_s26, %s811_s9  ;;  %p816_p9 = scmp.lt.u32.totalorder %s1204_s26, %s1253_s3 }
 0x24c   : > { %p817_p1 = scmp.lt.u32.totalorder %s815_s23, %s811_s9  ;;  %p819_p6 = scmp.lt.u32.totalorder %s811_s9, %s1204_s26 }
 0x24d   : > { %p813_p5 = pnand %p812_p4, %p1276_p11 }
 0x24e   : > { %p818_p3 = por %p817_p1, %p816_p9 }
 0x24f   : > { %p814_p7 = pneg %p813_p5 }
 0x250   : > { %p820_p12 = por %p819_p6, %p818_p3 }
 0x252   : > { %p821_p13 = pnand %p820_p12, %p814_p7 }
 0x254   : > { %824 = shalt.err (!%p821_p13)
}
 0x255   : > { %s872_s7 = smov 128   ;;  %s873_s8 = smov 8  }
 0x256   : > { %712 = dma.vmem_to_hbm [thread:$0]  (%p1276_p11), %s1206_s19, 256, %s1204_s26, %s451_s27, %s872_s7, %s872_s7, %s873_s8  }
 0x257 PF: > { %s479_s17 = sand.u32 1, %s851_s12   ;;  %p1277_p8 = scmp.ne.s32.totalorder %s1258_s25, 0 }
 0x258   : > { %p1278_p10 = scmp.ge.s32.totalorder %s863_s15, 2  ;;  %s480_s20 = scalar_lea.sflag [#allocation4], %s479_s17 }
 0x25a   : > { %p719_p0 = pnand %p1278_p10, %p1277_p8 }
 0x25c   : > { %846 = dma.done.wait (!%p719_p0), %s480_s20, 256  }
 0x25d   : > { %848 = vsyncadd (!%p719_p0), %s480_s20, 4294967040  ;;  %p16_p2 = scmp.ge.s32.totalorder %s919_s18, 4   ;;  %s1279_s12 = smov %s855_s13 }
 0x25e   : > { %s1280_s13 = smov %s859_s14  ;;  %s1281_s14 = smov %s931_s21 }
 0x25f   : > { %s1282_s15 = smov %s919_s18  ;;  %18 = sbr.rel (!%p16_p2) target bundleno = 5 (0x5), region = 77 }
 0x266   :  { %485 = vsyncpa [#allocation3], 1 }
 0x267   :  { %487 = vsyncpa [#allocation3 + $0x1], 1 }
 0x268   :  { %488 = vsyncpa [#allocation4], 1 }
 0x269   :  { %490 = vsyncpa [#allocation4 + $0x1], 1 }

</bundles_post_ra>
